<compile_context>
chip_gen: v7x
topology: tpu7x:2x2x1
jax: 0.10.0
libtpu: 0.0.40
codegen_flags: <defaults>
</compile_context>

<pallas_src>
import jax
import jax.numpy as jnp
from jax.experimental import pallas as pl
from jax.experimental.pallas import tpu as pltpu


def _linear_kernel(w_ref, b_ref, xt_ref, o_ref):
    """Lane-dense linear layer block.

    w_ref : (IN,)  f32 in SMEM   (scalar weights)
    b_ref : (1,)   f32 in SMEM   (scalar bias)
    xt_ref: (IN, TB) f32 in VMEM (batch on lanes)
    o_ref : (1, TB)  f32 in VMEM (lane-dense output)
    """
    in_features = xt_ref.shape[0]
    # y[0, :] = sum_k w[k] * x[k, :] + b   -- pure VPU broadcast FMAs.
    acc = xt_ref[0:1, :] * w_ref[0]
    for k in range(1, in_features):            # static, unrolled (IN == 3)
        acc = acc + xt_ref[k:k + 1, :] * w_ref[k]
    o_ref[...] = acc + b_ref[0]


def linear_forward(x, weight, bias, *, block_b=None):
    """x: (B, IN) f32, weight: (OUT, IN) f32 with OUT == 1, bias: (OUT,) f32
    -> (B, OUT) f32, identical semantics to torch.nn.Linear(IN, OUT)."""
    B, IN = x.shape
    OUT = weight.shape[0]
    assert OUT == 1 and weight.shape[1] == IN

    LANE = 128
    # Cap the per-step lane tile so 2x double-buffered input blocks stay tiny
    # (3 * 16384 * 4B ~= 192 KiB per block), well under v7x's 32 MiB scoped VMEM
    # while still amortizing the ~0.35us per-step overhead at large B.
    MAX_TB = 16384
    if block_b is None:
        tb = min(((B + LANE - 1) // LANE) * LANE, MAX_TB)
    else:
        tb = block_b
    B_pad = ((B + tb - 1) // tb) * tb

    # Layout plumbing in plain JAX: batch -> lanes, pad lanes to the tile size.
    xt = jnp.pad(x.astype(jnp.float32).T, ((0, 0), (0, B_pad - B)))  # (IN, B_pad)
    w1d = weight.reshape(IN).astype(jnp.float32)                      # (IN,)
    b1d = bias.reshape(OUT).astype(jnp.float32)                       # (1,)

    out = pl.pallas_call(
        _linear_kernel,
        out_shape=jax.ShapeDtypeStruct((1, B_pad), jnp.float32),
        grid=(B_pad // tb,),
        in_specs=[
            pl.BlockSpec(memory_space=pltpu.MemorySpace.SMEM),   # weights (scalars)
            pl.BlockSpec(memory_space=pltpu.MemorySpace.SMEM),   # bias (scalar)
            pl.BlockSpec((IN, tb), lambda i: (0, i)),            # lane-dense x block
        ],
        out_specs=pl.BlockSpec((1, tb), lambda i: (0, i)),       # lane-dense output
        compiler_params=pltpu.CompilerParams(
            dimension_semantics=("parallel",),                   # 2-TC sharding on v7x
        ),
    )(w1d, b1d, xt)

    # Un-pad and restore (B, OUT) layout outside the kernel.
    return out[0, :B].reshape(B, OUT)


if __name__ == "__main__":
    key = jax.random.PRNGKey(0)
    kx, kw, kb = jax.random.split(key, 3)

    B, IN, OUT = 8, 3, 1   # nn.Linear(3, 1); small batch of 8
    # NOTE: at B=8 this call is launch-overhead dominated; the kernel layout is
    # designed for the general large-B streaming case.

    # Deterministic "parameters" (PyTorch default init is U(-1/sqrt(IN), 1/sqrt(IN)))
    bound = 1.0 / jnp.sqrt(jnp.float32(IN))
    weight = jax.random.uniform(kw, (OUT, IN), jnp.float32, -bound, bound)
    bias = jax.random.uniform(kb, (OUT,), jnp.float32, -bound, bound)

    x = jax.random.normal(kx, (B, IN), jnp.float32)

    y = linear_forward(x, weight, bias)
    jax.block_until_ready(y)

    # Reference check against plain JAX (same semantics as torch.nn.Linear)
    y_ref = x @ weight.T + bias.reshape(1, OUT)
    assert y.shape == (B, OUT)
    assert jnp.allclose(y, y_ref, atol=1e-5, rtol=1e-5)

    print("KERNEL_OK")
</pallas_src>

<mosaic_0001>
module attributes {stable_mosaic.version = 11 : i64} {
  func.func @_linear_kernel(%arg0: i32, %arg1: memref<3xf32, #tpu.memory_space<smem>>, %arg2: memref<1xf32, #tpu.memory_space<smem>>, %arg3: memref<3x128xf32, #tpu.memory_space<vmem>>, %arg4: memref<1x128xf32, #tpu.memory_space<vmem>>) attributes {dimension_semantics = [#tpu.dimension_semantics<parallel>], iteration_bounds = array<i64: 1>, scalar_prefetch = 0 : i64, scratch_operands = 0 : i64, tpu.core_type = #tpu.core_type<tc>, window_params = [{transform_indices = @transform_0, window_bounds = array<i64: 3>}, {transform_indices = @transform_1, window_bounds = array<i64: 1>}, {transform_indices = @transform_2, window_bounds = array<i64: 3, 128>}, {transform_indices = @transform_3, window_bounds = array<i64: 1, 128>}]} {
    %c0 = arith.constant 0 : index
    %c0_0 = arith.constant 0 : index
    %0 = vector.load %arg3[%c0, %c0_0] : memref<3x128xf32, #tpu.memory_space<vmem>>, vector<1x128xf32>
    %c0_1 = arith.constant 0 : index
    %1 = memref.load %arg1[%c0_1] : memref<3xf32, #tpu.memory_space<smem>>
    %2 = vector.broadcast %1 : f32 to vector<1x128xf32>
    %3 = arith.mulf %0, %2 : vector<1x128xf32>
    %c1 = arith.constant 1 : index
    %c0_2 = arith.constant 0 : index
    %4 = vector.load %arg3[%c1, %c0_2] : memref<3x128xf32, #tpu.memory_space<vmem>>, vector<1x128xf32>
    %c1_3 = arith.constant 1 : index
    %5 = memref.load %arg1[%c1_3] : memref<3xf32, #tpu.memory_space<smem>>
    %6 = vector.broadcast %5 : f32 to vector<1x128xf32>
    %7 = arith.mulf %4, %6 : vector<1x128xf32>
    %8 = arith.addf %3, %7 : vector<1x128xf32>
    %c2 = arith.constant 2 : index
    %c0_4 = arith.constant 0 : index
    %9 = vector.load %arg3[%c2, %c0_4] : memref<3x128xf32, #tpu.memory_space<vmem>>, vector<1x128xf32>
    %c2_5 = arith.constant 2 : index
    %10 = memref.load %arg1[%c2_5] : memref<3xf32, #tpu.memory_space<smem>>
    %11 = vector.broadcast %10 : f32 to vector<1x128xf32>
    %12 = arith.mulf %9, %11 : vector<1x128xf32>
    %13 = arith.addf %8, %12 : vector<1x128xf32>
    %c0_6 = arith.constant 0 : index
    %14 = memref.load %arg2[%c0_6] : memref<1xf32, #tpu.memory_space<smem>>
    %15 = vector.broadcast %14 : f32 to vector<1x128xf32>
    %16 = arith.addf %13, %15 : vector<1x128xf32>
    %c0_7 = arith.constant 0 : index
    %c0_8 = arith.constant 0 : index
    %17 = vector.load %arg4[%c0_7, %c0_8] : memref<1x128xf32, #tpu.memory_space<vmem>>, vector<1x128xf32>
    tpu.vector_store %arg4[%c0_7, %c0_8], %16 {strides = array<i32>} : memref<1x128xf32, #tpu.memory_space<vmem>>, vector<1x128xf32>,
    return
  }
  func.func @transform_0(%arg0: i32) -> i32 {
    %c0_i32 = arith.constant 0 : i32
    %c0_i32_0 = arith.constant 0 : i32
    return %c0_i32 : i32
  }
  func.func @transform_1(%arg0: i32) -> i32 {
    %c0_i32 = arith.constant 0 : i32
    %c0_i32_0 = arith.constant 0 : i32
    return %c0_i32 : i32
  }
  func.func @transform_2(%arg0: i32) -> (i32, i32) {
    %c0_i32 = arith.constant 0 : i32
    %c0_i32_0 = arith.constant 0 : i32
    return %c0_i32, %arg0 : i32, i32
  }
  func.func @transform_3(%arg0: i32) -> (i32, i32) {
    %c0_i32 = arith.constant 0 : i32
    %c0_i32_0 = arith.constant 0 : i32
    return %c0_i32, %arg0 : i32, i32
  }
}

</mosaic_0001>

<bundles_post_ra>
// kernel: tpu_custom_call.1
= control target key start
LH: loop header
LB: loop body
LE: loop exit
PB: predicated region body
PF: predicated region fallthrough
CT: control target
= control target key end

     0   :  { %9 = vsyncpa [#allocation5], 0  ;;  %s153_s0 = inlined_call_operand.vmem [shape: f32[3], index: 0, kind: input, shape index: {}]   ;;  %s154_s1 = inlined_call_operand.<no memory space> [shape: f32[1], index: 1, kind: input, shape index: {}]   ;;  %s155_s2 = inlined_call_operand.vmem [shape: f32[3,128], index: 2, kind: input, shape index: {}]   ;;  %s156_s3 = inlined_call_operand.hbm [shape: f32[1,128], index: 3, kind: output, shape index: {}]  }
   0x1   :  { %10 = vsyncpa [#allocation4], 0  ;;  %s17_s14 = sshll.u32 %s153_s0, 4  ;;  %s18_s14 = int_to_ptr.vmem [resolvable:$true] %s17_s14 }
   0x2   :  { %s66_s15 = scalar_lea.vmem %s18_s14, 16  ;;  %p71_p1 = scmp.lt.s32.totalorder %s18_s14, %s18_s14 }
   0x3   :  { %p67_p0 = scmp.ne.s32.totalorder %s18_s14, %s66_s15  ;;  %p72_p2 = scmp.lt.s32.totalorder %s66_s15, %s66_s15 }
   0x5   :  { %p73_p3 = por %p72_p2, %p71_p1 }
   0x7   :  { %p74_p4 = pnand %p73_p3, %p67_p0 }
   0x9   :  { %77 = shalt.err (!%p74_p4)
}
   0xa   :  { %s104_s16 = smov [#allocation3]  }
   0xb   :  { %20 = dma.vmem_to_smem %s18_s14, 16, %s104_s16, [#allocation5]  }
   0xc   :  { %100 = dma.done.wait [#allocation5], 16  }
   0xd   :  { %101 = vsyncadd [#allocation5], 4294967280 }
   0xe   :  { %28 = sfence }
   0xf   :  { %s30_s17 = sld [smem:[#allocation3]]  ;;  %s62_s18 = sld [smem:[#allocation3 + $0x1]]  ;;  %v29_v0 = vld [vmem:[%s155_s2] sm:$0x1]  ;;  %v33_v1 = vld [vmem:[%s155_s2 + $0x1] sm:$0x1]  ;;  %v44_v10 = vstv %s154_s1 }
  0x10   :  { %s63_s19 = sld [smem:[#allocation3 + $0x2]]  ;;  %v38_v2 = vld [vmem:[%s155_s2 + $0x2] sm:$0x1]  ;;  %s105_s27 = smov [#allocation6]  }
  0x11   :  { %s53_s28 = sshll.u32 %s105_s27, 4  ;;  %s54_s28 = int_to_ptr.vmem [resolvable:$true] %s53_s28 }
  0x12   :  { %s78_s29 = scalar_lea.vmem %s54_s28, 16  ;;  %s82_s2 = scalar_lea.vmem %s54_s28, 32 }
  0x13   :  { %p79_p5 = scmp.ne.s32.totalorder %s54_s28, %s78_s29  ;;  %p83_p6 = scmp.lt.s32.totalorder %s54_s28, %s54_s28 }
  0x14   :  { %p84_p7 = scmp.lt.s32.totalorder %s82_s2, %s78_s29 }
  0x15   :  { %v31_v3 = vstv %s30_s17  ;;  %v35_v5 = vstv %s62_s18 }
  0x16   :  { %v32_v4 = vmul.f32 %v31_v3, %v29_v0  ;;  %v40_v6 = vstv %s63_s19  ;;  %v36_v7 = vmul.f32 %v35_v5, %v33_v1  ;;  %p85_p8 = por %p84_p7, %p83_p6 }
  0x17   :  { %v41_v8 = vmul.f32 %v40_v6, %v38_v2 }
  0x18   :  { %v37_v9 = vadd.f32 %v36_v7, %v32_v4  ;;  %p86_p9 = pnand %p85_p8, %p79_p5 }
  0x1a   :  { %v42_v11 = vadd.f32 %v41_v8, %v37_v9 }
  0x1c   :  { %v45_v12 = vadd.f32 %v44_v10, %v42_v11 }
  0x1e   :  { %46 = vst [vmem:[#allocation6] sm:$0x1] %v45_v12 }
  0x1f   :  { %89 = shalt.err (!%p86_p9)
}
  0x20   :  { %s90_s5 = scalar_lea.hbm %s156_s3, 16 }
  0x21   :  { %p91_p10 = scmp.ne.s32.totalorder %s156_s3, %s90_s5  ;;  %p94_p11 = scmp.lt.u32.totalorder %s90_s5, %s156_s3 }
  0x23   :  { %p96_p12 = pnand %p94_p11, %p91_p10 }
  0x25   :  { %99 = shalt.err (!%p96_p12)
}
  0x26   :  { %56 = dma.vmem_to_hbm [thread:$0]  %s54_s28, 16, %s156_s3, [#allocation4]  }
  0x27   :  { %102 = dma.done.wait [#allocation4], 16  }
  0x28   :  { %103 = vsyncadd [#allocation4], 4294967280 }
  0x29   :  { %60 = vsyncpa [#allocation4], 1 }
  0x2a   :  { %61 = vsyncpa [#allocation5], 1 }

</bundles_post_ra>
